<compile_context>
chip_gen: v5e
topology: v5e:2x2
jax: 0.10.0
libtpu: 0.0.40
codegen_flags: <defaults>
</compile_context>

<pallas_src>
import functools
import math

import jax
import jax.numpy as jnp
from jax.experimental import pallas as pl
from jax.experimental.pallas import tpu as pltpu


def _round_up(v, m):
    return (v + m - 1) // m * m


def _pick_k_pad(k, c):
    """Smallest m >= k with (m*c) % 128 == 0 (lane-dense neighbor block), if the
    padding overhead stays bounded; otherwise keep k."""
    step = 128 // math.gcd(128, c)
    m = _round_up(k, step)
    return m if m <= 2 * k else k


# ----------------------------------------------------------------------------
# Pallas kernel: fused EdgeConv (max aggregation) + shortcut linear.
# ----------------------------------------------------------------------------
def _edgeconv_kernel(x_ref, xn_ref, wcat_ref, bcat_ref, w2b_ref, o_ref, *, k_pad, co):
    """One tile of nodes.

    x_ref    : (TN, C)              node features x_i
    xn_ref   : (TN, k_pad*C)        gathered neighbors, node-major & lane-dense
    wcat_ref : (C, 2*Co)            [W1 - W2 | Ws]  (edge-center | shortcut weights)
    bcat_ref : (1, 2*Co)            [b_e | b_s]
    w2b_ref  : (k_pad*C, k_pad*Co)  block-diagonal neighbor weights (W2 on the diag)
    o_ref    : (TN, Co)
    """
    xi = x_ref[...]

    # One MXU dot covers both x_i contributions (edge-center term + shortcut).
    h = jnp.dot(xi, wcat_ref[...], preferred_element_type=jnp.float32) + bcat_ref[...]
    s = h[:, :co]        # x_i @ (W1 - W2) + b_e   (edge-MLP center term)
    sc = h[:, co:]       # x_i @ Ws + b_s          (shortcut nn(x))

    # One full-depth MXU dot for ALL k_pad neighbors at once:
    #   (TN, k_pad*C) @ block_diag(W2, ..., W2) -> (TN, k_pad*Co)
    # replaces k_pad separate 16-deep dots (each underfilling the systolic array).
    hb = jnp.dot(xn_ref[...], w2b_ref[...], preferred_element_type=jnp.float32)

    # Running max over the Co-wide lane slices (pure VPU max; the static lane
    # selects go to the otherwise idle XLU).  k_pad is small (8) -> static unroll.
    acc = jnp.maximum(hb[:, :co] + s, 0.0)
    for kk in range(1, k_pad):
        e = jnp.maximum(hb[:, kk * co:(kk + 1) * co] + s, 0.0)
        acc = jnp.maximum(acc, e)

    o_ref[...] = (acc + sc).astype(o_ref.dtype)


def edgeconv_pn_pallas(x, xn, We, be, Ws, bs, *, out_dtype, tile_n=None,
                       compute_dtype=None):
    """x: [N, C] (already in compute dtype); xn: [N, k_pad*C] gathered neighbors
    (node-major, already in compute dtype); We: [2C, Co]; Ws: [C, Co]."""
    n, c = x.shape
    kpc = xn.shape[1]
    k_pad = kpc // c
    co = We.shape[1]
    if compute_dtype is None:
        compute_dtype = x.dtype

    # Exact weight algebra, done once in f32 in the wrapper:
    #   [x_i, x_j - x_i] @ We = x_i @ (W1 - W2) + x_j @ W2
    w1, w2 = We[:c], We[c:]
    w_cat = jnp.concatenate([w1 - w2, Ws], axis=1).astype(compute_dtype)     # (C, 2Co)
    b_cat = jnp.concatenate([be, bs]).reshape(1, 2 * co).astype(jnp.float32)
    # Block-diagonal neighbor weights -> a single full-depth MXU contraction.
    w2_blk = jnp.kron(jnp.eye(k_pad, dtype=We.dtype), w2).astype(compute_dtype)

    # Tile selection: large tiles amortise the ~0.35us per-grid-step pipeline
    # overhead; keep the grid >= ~8 steps so the "parallel" axis can still be split
    # across v7x's two TensorCores.  Double-buffered VMEM stays at a few MiB, well
    # inside even v7x's 64 MiB/TC (no vmem_limit override needed).
    if tile_n is None:
        tile_n = min(2048, max(256, _round_up(pl.cdiv(n, 8), 16)))
        tile_n = min(tile_n, _round_up(n, 16))
    tile_n = _round_up(tile_n, 16)                 # sublane-safe for f32 and bf16
    n_pad = _round_up(n, tile_n)
    if n_pad != n:
        x = jnp.pad(x, ((0, n_pad - n), (0, 0)))
        xn = jnp.pad(xn, ((0, n_pad - n), (0, 0)))

    xc = x.astype(compute_dtype)    # no-op when cast-before-gather already applied
    xnc = xn.astype(compute_dtype)

    grid = (n_pad // tile_n,)
    out = pl.pallas_call(
        functools.partial(_edgeconv_kernel, k_pad=k_pad, co=co),
        out_shape=jax.ShapeDtypeStruct((n_pad, co), out_dtype),
        grid_spec=pltpu.PrefetchScalarGridSpec(
            num_scalar_prefetch=0,
            grid=grid,
            in_specs=[
                pl.BlockSpec((tile_n, c), lambda i: (i, 0)),         # x_i tile
                # Dominant stream: lane-dense (tile_n, k_pad*C) neighbor block.
                # If xprof shows exposed DMA here, add pipeline_mode=pl.Buffered(3).
                pl.BlockSpec((tile_n, kpc), lambda i: (i, 0)),
                pl.BlockSpec((c, 2 * co), lambda i: (0, 0)),         # [W1-W2 | Ws]
                pl.BlockSpec((1, 2 * co), lambda i: (0, 0)),         # [b_e | b_s]
                pl.BlockSpec((kpc, k_pad * co), lambda i: (0, 0)),   # block-diag W2
            ],
            out_specs=pl.BlockSpec((tile_n, co), lambda i: (i, 0)),
        ),
        compiler_params=pltpu.CompilerParams(dimension_semantics=("parallel",)),
        # TODO(synk): Co (=32) < 128 lanes -> masked output stores; the lane-dense
        # repack ((TN,Co)->(TN//4,128) reshape) is not a relayout Mosaic reliably
        # supports, and zero-padding Co to 128 would 4x the output HBM stream, so
        # the masked store is kept.
    )(xc, xnc, w_cat, b_cat, w2_blk)
    return out[:n]


# ----------------------------------------------------------------------------
# Glue: knn_graph (k nearest same-graph neighbors, no self loops) + gather.
# ----------------------------------------------------------------------------
def knn_indices(pos, batch, k):
    """PyG knn_graph semantics.  Slots with no valid neighbor (graph smaller than
    k+1 nodes) are filled with a duplicate of the nearest valid neighbor; max
    aggregation is invariant to duplicates, so results match PyG whenever every
    graph has >= 2 nodes."""
    n = pos.shape[0]
    # Distances via ||a||^2 + ||b||^2 - 2 a.b^T (one matmul, no (N,N,3) temporary).
    sq = jnp.sum(pos * pos, axis=-1)
    d2 = sq[:, None] + sq[None, :] - 2.0 * (pos @ pos.T)              # (N, N)
    valid_pair = (batch[:, None] == batch[None, :]) & ~jnp.eye(n, dtype=bool)
    d2 = jnp.where(valid_pair, d2, jnp.inf)
    # TODO(synk): dense O(N^2) top_k in XLA; a tiled Pallas knn / lax.approx_max_k
    # is needed for large point clouds.
    neg_d, idx = jax.lax.top_k(-d2, k)                                # (N, k) nearest
    valid = jnp.isfinite(neg_d)
    # TODO(synk): single-node graphs (zero valid neighbors) are not special-cased
    # (PyG emits no edges for such nodes).  Tie-breaking may differ from PyG.
    return jnp.where(valid, idx, idx[:, :1])


def dynamic_edgeconv_pn(x, pos, batch, params, k=7, *, tile_n=None, compute_dtype=None):
    out_dtype = x.dtype
    if compute_dtype is None:
        compute_dtype = x.dtype
    n, c = x.shape

    idx = knn_indices(pos, batch, k)                          # (N, k)
    k_pad = _pick_k_pad(k, c)                                 # k=7, C=16 -> 8 (lane-dense)
    if k_pad != k:
        # Duplicate the nearest neighbor; max aggregation is duplicate-invariant.
        idx = jnp.concatenate(
            [idx, jnp.broadcast_to(idx[:, :1], (n, k_pad - k))], axis=1)

    # Cast BEFORE the gather so the dominant (N, k_pad*C) stream is produced and
    # consumed in compute_dtype (halves gather write/read bytes for bf16).
    xc = x.astype(compute_dtype)
    # TODO(synk): this gather is still an HBM round trip (write + read of ~k*N*C);
    # removing it needs an in-kernel dynamic row-gather from a VMEM-resident x
    # (jnp.take does not lower to that in Mosaic today) plus explicit residency
    # budgeting for v7x's 64 MiB/TC VMEM.
    xn = jnp.take(xc, idx, axis=0).reshape(n, k_pad * c)      # node-major, lane-dense

    return edgeconv_pn_pallas(xc, xn, params["We"], params["be"],
                              params["Ws"], params["bs"],
                              out_dtype=out_dtype, tile_n=tile_n,
                              compute_dtype=compute_dtype)


# ----------------------------------------------------------------------------
# Pure-JAX reference for correctness check.
# ----------------------------------------------------------------------------
def reference(x, pos, batch, params, k=7):
    idx = knn_indices(pos, batch, k)
    xj = x[idx]                                               # (N, k, C)
    xi = jnp.broadcast_to(x[:, None, :], xj.shape)
    ef = jnp.concatenate([xi, xj - xi], axis=-1)              # (N, k, 2C)
    h = jax.nn.relu(ef @ params["We"] + params["be"])
    edge_out = jnp.max(h, axis=1)
    x_out = x @ params["Ws"] + params["bs"]
    return edge_out + x_out


if __name__ == "__main__":
    key = jax.random.PRNGKey(0)
    k_x, k_pos, k_we, k_be, k_ws, k_bs = jax.random.split(key, 6)

    # 2 graphs x 16 nodes each, C_in=16, C_out=32, k=7, pos dim=3
    N_PER_GRAPH, N_GRAPHS = 16, 2
    N = N_PER_GRAPH * N_GRAPHS
    C_IN, C_OUT, K = 16, 32, 7

    x = jax.random.normal(k_x, (N, C_IN), dtype=jnp.float32)
    pos = jax.random.normal(k_pos, (N, 3), dtype=jnp.float32)
    batch = jnp.repeat(jnp.arange(N_GRAPHS, dtype=jnp.int32), N_PER_GRAPH)

    params = {
        "We": jax.random.normal(k_we, (2 * C_IN, C_OUT), dtype=jnp.float32) * 0.1,
        "be": jax.random.normal(k_be, (C_OUT,), dtype=jnp.float32) * 0.1,
        "Ws": jax.random.normal(k_ws, (C_IN, C_OUT), dtype=jnp.float32) * 0.1,
        "bs": jax.random.normal(k_bs, (C_OUT,), dtype=jnp.float32) * 0.1,
    }

    ref = reference(x, pos, batch, params, k=K)

    # f32 path (default tile selection, grid of 1 at this tiny N)
    out = dynamic_edgeconv_pn(x, pos, batch, params, k=K)
    out = jax.block_until_ready(out)
    assert out.shape == (N, C_OUT), out.shape
    assert jnp.allclose(out, ref, atol=1e-3, rtol=1e-3), (
        float(jnp.max(jnp.abs(out - ref))))

    # f32 path, forced small tiles -> exercises a multi-step "parallel" grid.
    out_mt = dynamic_edgeconv_pn(x, pos, batch, params, k=K, tile_n=16)
    out_mt = jax.block_until_ready(out_mt)
    assert jnp.allclose(out_mt, ref, atol=1e-3, rtol=1e-3), (
        float(jnp.max(jnp.abs(out_mt - ref))))

    # bf16-operand path (f32 accumulation) — halves the dominant HBM stream.
    # Valid on v5e/v6e/v7x: the MXU takes bf16 operands everywhere; all elementwise
    # math stays in f32.  (Note: computes x_i@(W1-W2)+x_j@W2 in bf16 instead of
    # forming x_j-x_i first — intentional numerical deviation vs the reference.)
    out_bf16 = dynamic_edgeconv_pn(x, pos, batch, params, k=K,
                                   compute_dtype=jnp.bfloat16)
    out_bf16 = jax.block_until_ready(out_bf16)
    assert jnp.allclose(out_bf16, ref, atol=1e-1, rtol=1e-1), (
        float(jnp.max(jnp.abs(out_bf16 - ref))))

    print("KERNEL_OK")
</pallas_src>

<mosaic_0001>
module attributes {stable_mosaic.version = 11 : i64} {
  func.func @_edgeconv_kernel(%arg0: i32, %arg1: memref<32x16xf32, #tpu.memory_space<vmem>>, %arg2: memref<32x128xf32, #tpu.memory_space<vmem>>, %arg3: memref<16x64xf32, #tpu.memory_space<vmem>>, %arg4: memref<1x64xf32, #tpu.memory_space<vmem>>, %arg5: memref<128x256xf32, #tpu.memory_space<vmem>>, %arg6: memref<32x32xf32, #tpu.memory_space<vmem>>) attributes {dimension_semantics = [#tpu.dimension_semantics<parallel>], iteration_bounds = array<i64: 1>, scalar_prefetch = 0 : i64, scratch_operands = 0 : i64, tpu.core_type = #tpu.core_type<tc>, window_params = [{transform_indices = @transform_0, window_bounds = array<i64: 32, 16>}, {transform_indices = @transform_1, window_bounds = array<i64: 32, 128>}, {pipeline_mode = #tpu.pipeline_mode<synchronous>, transform_indices = @transform_2, window_bounds = array<i64: 16, 64>}, {pipeline_mode = #tpu.pipeline_mode<synchronous>, transform_indices = @transform_3, window_bounds = array<i64: 1, 64>}, {pipeline_mode = #tpu.pipeline_mode<synchronous>, transform_indices = @transform_4, window_bounds = array<i64: 128, 256>}, {transform_indices = @transform_5, window_bounds = array<i64: 32, 32>}]} {
    %c0 = arith.constant 0 : index
    %c0_0 = arith.constant 0 : index
    %0 = vector.load %arg1[%c0, %c0_0] : memref<32x16xf32, #tpu.memory_space<vmem>>, vector<32x16xf32>
    %c0_1 = arith.constant 0 : index
    %c0_2 = arith.constant 0 : index
    %1 = vector.load %arg3[%c0_1, %c0_2] : memref<16x64xf32, #tpu.memory_space<vmem>>, vector<16x64xf32>
    %cst = arith.constant dense<0.000000e+00> : vector<32x64xf32>
    %2 = tpu.matmul %0, %1, %cst {dimension_numbers = #tpu.dot_dimension_numbers<[1], [0], [0], [1], [0, 0, 1, 1], [], []>} : vector<32x16xf32>, vector<16x64xf32>, vector<32x64xf32> -> vector<32x64xf32>
    %c0_3 = arith.constant 0 : index
    %c0_4 = arith.constant 0 : index
    %3 = vector.load %arg4[%c0_3, %c0_4] : memref<1x64xf32, #tpu.memory_space<vmem>>, vector<1x64xf32>
    %4 = vector.broadcast %3 : vector<1x64xf32> to vector<32x64xf32>
    %5 = arith.addf %2, %4 : vector<32x64xf32>
    %6 = vector.extract_strided_slice %5 {offsets = [0, 0], sizes = [32, 32], strides = [1, 1]} : vector<32x64xf32> to vector<32x32xf32>
    %7 = vector.extract_strided_slice %5 {offsets = [0, 32], sizes = [32, 32], strides = [1, 1]} : vector<32x64xf32> to vector<32x32xf32>
    %c0_5 = arith.constant 0 : index
    %c0_6 = arith.constant 0 : index
    %8 = vector.load %arg2[%c0_5, %c0_6] : memref<32x128xf32, #tpu.memory_space<vmem>>, vector<32x128xf32>
    %c0_7 = arith.constant 0 : index
    %c0_8 = arith.constant 0 : index
    %9 = vector.load %arg5[%c0_7, %c0_8] : memref<128x256xf32, #tpu.memory_space<vmem>>, vector<128x256xf32>
    %cst_9 = arith.constant dense<0.000000e+00> : vector<32x256xf32>
    %10 = tpu.matmul %8, %9, %cst_9 {dimension_numbers = #tpu.dot_dimension_numbers<[1], [0], [0], [1], [0, 0, 1, 1], [], []>} : vector<32x128xf32>, vector<128x256xf32>, vector<32x256xf32> -> vector<32x256xf32>
    %11 = vector.extract_strided_slice %10 {offsets = [0, 0], sizes = [32, 32], strides = [1, 1]} : vector<32x256xf32> to vector<32x32xf32>
    %12 = arith.addf %11, %6 : vector<32x32xf32>
    %cst_10 = arith.constant 0.000000e+00 : f32
    %13 = vector.broadcast %cst_10 : f32 to vector<32x32xf32>
    %14 = arith.maximumf %12, %13 : vector<32x32xf32>
    %15 = vector.extract_strided_slice %10 {offsets = [0, 32], sizes = [32, 32], strides = [1, 1]} : vector<32x256xf32> to vector<32x32xf32>
    %16 = arith.addf %15, %6 : vector<32x32xf32>
    %cst_11 = arith.constant 0.000000e+00 : f32
    %17 = vector.broadcast %cst_11 : f32 to vector<32x32xf32>
    %18 = arith.maximumf %16, %17 : vector<32x32xf32>
    %19 = arith.maximumf %14, %18 : vector<32x32xf32>
    %20 = vector.extract_strided_slice %10 {offsets = [0, 64], sizes = [32, 32], strides = [1, 1]} : vector<32x256xf32> to vector<32x32xf32>
    %21 = arith.addf %20, %6 : vector<32x32xf32>
    %cst_12 = arith.constant 0.000000e+00 : f32
    %22 = vector.broadcast %cst_12 : f32 to vector<32x32xf32>
    %23 = arith.maximumf %21, %22 : vector<32x32xf32>
    %24 = arith.maximumf %19, %23 : vector<32x32xf32>
    %25 = vector.extract_strided_slice %10 {offsets = [0, 96], sizes = [32, 32], strides = [1, 1]} : vector<32x256xf32> to vector<32x32xf32>
    %26 = arith.addf %25, %6 : vector<32x32xf32>
    %cst_13 = arith.constant 0.000000e+00 : f32
    %27 = vector.broadcast %cst_13 : f32 to vector<32x32xf32>
    %28 = arith.maximumf %26, %27 : vector<32x32xf32>
    %29 = arith.maximumf %24, %28 : vector<32x32xf32>
    %30 = vector.extract_strided_slice %10 {offsets = [0, 128], sizes = [32, 32], strides = [1, 1]} : vector<32x256xf32> to vector<32x32xf32>
    %31 = arith.addf %30, %6 : vector<32x32xf32>
    %cst_14 = arith.constant 0.000000e+00 : f32
    %32 = vector.broadcast %cst_14 : f32 to vector<32x32xf32>
    %33 = arith.maximumf %31, %32 : vector<32x32xf32>
    %34 = arith.maximumf %29, %33 : vector<32x32xf32>
    %35 = vector.extract_strided_slice %10 {offsets = [0, 160], sizes = [32, 32], strides = [1, 1]} : vector<32x256xf32> to vector<32x32xf32>
    %36 = arith.addf %35, %6 : vector<32x32xf32>
    %cst_15 = arith.constant 0.000000e+00 : f32
    %37 = vector.broadcast %cst_15 : f32 to vector<32x32xf32>
    %38 = arith.maximumf %36, %37 : vector<32x32xf32>
    %39 = arith.maximumf %34, %38 : vector<32x32xf32>
    %40 = vector.extract_strided_slice %10 {offsets = [0, 192], sizes = [32, 32], strides = [1, 1]} : vector<32x256xf32> to vector<32x32xf32>
    %41 = arith.addf %40, %6 : vector<32x32xf32>
    %cst_16 = arith.constant 0.000000e+00 : f32
    %42 = vector.broadcast %cst_16 : f32 to vector<32x32xf32>
    %43 = arith.maximumf %41, %42 : vector<32x32xf32>
    %44 = arith.maximumf %39, %43 : vector<32x32xf32>
    %45 = vector.extract_strided_slice %10 {offsets = [0, 224], sizes = [32, 32], strides = [1, 1]} : vector<32x256xf32> to vector<32x32xf32>
    %46 = arith.addf %45, %6 : vector<32x32xf32>
    %cst_17 = arith.constant 0.000000e+00 : f32
    %47 = vector.broadcast %cst_17 : f32 to vector<32x32xf32>
    %48 = arith.maximumf %46, %47 : vector<32x32xf32>
    %49 = arith.maximumf %44, %48 : vector<32x32xf32>
    %50 = arith.addf %49, %7 : vector<32x32xf32>
    %c0_18 = arith.constant 0 : index
    %c0_19 = arith.constant 0 : index
    %51 = vector.load %arg6[%c0_18, %c0_19] : memref<32x32xf32, #tpu.memory_space<vmem>>, vector<32x32xf32>
    tpu.vector_store %arg6[%c0_18, %c0_19], %50 {strides = array<i32>} : memref<32x32xf32, #tpu.memory_space<vmem>>, vector<32x32xf32>,
    return
  }
  func.func @transform_0(%arg0: i32) -> (i32, i32) {
    %c0_i32 = arith.constant 0 : i32
    %c0_i32_0 = arith.constant 0 : i32
    return %arg0, %c0_i32 : i32, i32
  }
  func.func @transform_1(%arg0: i32) -> (i32, i32) {
    %c0_i32 = arith.constant 0 : i32
    %c0_i32_0 = arith.constant 0 : i32
    return %arg0, %c0_i32 : i32, i32
  }
  func.func @transform_2(%arg0: i32) -> (i32, i32) {
    %c0_i32 = arith.constant 0 : i32
    %c0_i32_0 = arith.constant 0 : i32
    %c0_i32_1 = arith.constant 0 : i32
    return %c0_i32, %c0_i32_0 : i32, i32
  }
  func.func @transform_3(%arg0: i32) -> (i32, i32) {
    %c0_i32 = arith.constant 0 : i32
    %c0_i32_0 = arith.constant 0 : i32
    %c0_i32_1 = arith.constant 0 : i32
    return %c0_i32, %c0_i32_0 : i32, i32
  }
  func.func @transform_4(%arg0: i32) -> (i32, i32) {
    %c0_i32 = arith.constant 0 : i32
    %c0_i32_0 = arith.constant 0 : i32
    %c0_i32_1 = arith.constant 0 : i32
    return %c0_i32, %c0_i32_0 : i32, i32
  }
  func.func @transform_5(%arg0: i32) -> (i32, i32) {
    %c0_i32 = arith.constant 0 : i32
    %c0_i32_0 = arith.constant 0 : i32
    return %arg0, %c0_i32 : i32, i32
  }
}

</mosaic_0001>

<bundles_post_ra>
// kernel: tpu_custom_call.1
= control target key start
LH: loop header
LB: loop body
LE: loop exit
PB: predicated region body
PF: predicated region fallthrough
CT: control target
= control target key end

     0   :  { %10 = vsyncpa [#allocation3], 0  ;;  %s755_s0 = inlined_call_operand.vmem [shape: f32[32,16], index: 0, kind: input, shape index: {}]   ;;  %s756_s1 = inlined_call_operand.vmem [shape: f32[32,128], index: 1, kind: input, shape index: {}]   ;;  %s757_s2 = inlined_call_operand.vmem [shape: f32[16,64], index: 2, kind: input, shape index: {}]   ;;  %s758_s3 = inlined_call_operand.vmem [shape: f32[1,64], index: 3, kind: input, shape index: {}]   ;;  %s759_s4 = inlined_call_operand.hbm [shape: f32[128,256], index: 4, kind: input, shape index: {}]   ;;  %s760_s5 = inlined_call_operand.hbm [shape: f32[32,32], index: 5, kind: output, shape index: {}]  }
   0x1   :  { %11 = vsyncpa [#allocation4], 0  ;;  %s24_s20 = sshll.u32 %s759_s4, 4  ;;  %s537_s21 = smov [#allocation2]   ;;  %s25_s20 = int_to_ptr.hbm [resolvable:$true] %s24_s20 }
   0x2   :  { %s26_s22 = sshll.u32 %s537_s21, 4  ;;  %s538_s23 = smov 256   ;;  %s27_s22 = int_to_ptr.vmem [resolvable:$true] %s26_s22 }
   0x3   :  { %s539_s24 = smov 16  }
   0x4   :  { %32 = dma.hbm_to_vmem [thread:$0]  %s25_s20, 4096, %s27_s22, [#allocation3], %s538_s23, %s538_s23, %s539_s24  }
   0x5   :  { %533 = dma.done.wait [#allocation3], 4096  }
   0x6   :  { %534 = vsyncadd [#allocation3], 4294963200  ;;  %v42_v0 = vld [vmem:[%s757_s2 + $0x8] sm:$0xff]  ;;  %v123_v1 = vld [vmem:[#allocation2 + $0xf0] sm:$0xff]  ;;  %vm47_vm0 = vcmask 130048   ;;  %s540_s19 = smov 64  }
   0x7   :  { %v124_v2 = vld [vmem:[#allocation2 + $0xf8] sm:$0xff]  ;;  %74 = vmatpush.msra.mxu0 %v42_v0  ;;  %125 = vmatpush.msra.mxu1 %v123_v1  ;;  %v41_v3 = vld [vmem:[%s757_s2] sm:$0xff]  ;;  %v122_v5 = vld [vmem:[#allocation2 + $0xe8] sm:$0xff]  ;;  %s541_s20 = smov 32   ;;  %vm415_vm1 = vcmask 261120   ;;  %s426_s24 = sshll.u32 %s760_s5, 4  ;;  %s427_s24 = int_to_ptr.hbm [resolvable:$true] %s426_s24 }
   0x8   :  { %v121_v4 = vld [vmem:[#allocation2 + $0xe0] sm:$0xff]  ;;  %443 = vmatpush.msra.mxu3 %v123_v1  ;;  %459 = vmatpush.msra.mxu2 %v124_v2  ;;  %v119_v7 = vld [vmem:[#allocation2 + $0xd0] sm:$0xff]  ;;  %v120_v8 = vld [vmem:[#allocation2 + $0xd8] sm:$0xff]  ;;  %s544_s25 = smov 128   ;;  %s545_s26 = smov 8  }
   0x9   :  { %v37_v6 = vld [vmem:[%s755_s0] sm:$0xff]  ;;  %75 = vmatpush.msra.mxu0 %v41_v3  ;;  %126 = vmatpush.msra.mxu1 %v121_v4  ;;  %v118_v10 = vld [vmem:[#allocation2 + $0xc8] sm:$0xff]  ;;  %v115_v11 = vld [vmem:[#allocation2 + $0xb0] sm:$0xff] }
   0xa   :  { %444 = vmatpush.msra.mxu3 %v121_v4  ;;  %460 = vmatpush.msra.mxu2 %v122_v5  ;;  %v117_v9 = vld [vmem:[#allocation2 + $0xc0] sm:$0xff]  ;;  %v116_v12 = vld [vmem:[#allocation2 + $0xb8] sm:$0xff]  ;;  %v114_v14 = vld [vmem:[#allocation2 + $0xa8] sm:$0xff] }
   0xb   :  { %439 = vmatmul.msk.f32.vlgmr.msra.gmra.mxu0 %vm47_vm0, %v37_v6  ;;  %127 = vmatpush.msra.mxu1 %v119_v7  ;;  %v113_v13 = vld [vmem:[#allocation2 + $0xa0] sm:$0xff]  ;;  %v38_v15 = vld [vmem:[%s755_s0 + $0x8] sm:$0xff]  ;;  %v111_v16 = vld [vmem:[#allocation2 + $0x90] sm:$0xff] }
   0xc   :  { %445 = vmatpush.msra.mxu3 %v119_v7  ;;  %154 = vmatpush.msrb.mxu0 %v124_v2  ;;  %v112_v17 = vld [vmem:[#allocation2 + $0x98] sm:$0xff]  ;;  %v109_v18 = vld [vmem:[#allocation2 + $0x80] sm:$0xff]  ;;  %v110_v19 = vld [vmem:[#allocation2 + $0x88] sm:$0xff] }
   0xd   :  { %461 = vmatpush.msra.mxu2 %v120_v8  ;;  %128 = vmatpush.msra.mxu1 %v117_v9  ;;  %v107_v20 = vld [vmem:[#allocation2 + $0x70] sm:$0xff]  ;;  %v108_v21 = vld [vmem:[#allocation2 + $0x78] sm:$0xff]  ;;  %v105_v22 = vld [vmem:[#allocation2 + $0x60] sm:$0xff] }
   0xe   :  { %446 = vmatpush.msra.mxu3 %v117_v9  ;;  %155 = vmatpush.msrb.mxu0 %v122_v5  ;;  %v106_v23 = vld [vmem:[#allocation2 + $0x68] sm:$0xff]  ;;  %v39_v24 = vld [vmem:[%s755_s0 + $0x10] sm:$0xff]  ;;  %v104_v26 = vld [vmem:[#allocation2 + $0x58] sm:$0xff] }
   0xf   :  { %462 = vmatpush.msra.mxu2 %v118_v10  ;;  %129 = vmatpush.msra.mxu1 %v115_v11  ;;  %v103_v25 = vld [vmem:[#allocation2 + $0x50] sm:$0xff]  ;;  %v101_v27 = vld [vmem:[#allocation2 + $0x40] sm:$0xff]  ;;  %v102_v28 = vld [vmem:[#allocation2 + $0x48] sm:$0xff] }
  0x10   :  { %447 = vmatpush.msra.mxu3 %v115_v11  ;;  %156 = vmatpush.msrb.mxu0 %v120_v8  ;;  %v99_v29 = vld [vmem:[#allocation2 + $0x30] sm:$0xff]  ;;  %v100_v30 = vld [vmem:[#allocation2 + $0x38] sm:$0xff]  ;;  %v97_v31 = vld [vmem:[#allocation2 + $0x20] sm:$0xff] }
  0x11   :  { %463 = vmatpush.msra.mxu2 %v116_v12  ;;  %130 = vmatpush.msra.mxu1 %v113_v13  ;;  %v98_v32 = vld [vmem:[#allocation2 + $0x28] sm:$0xff]  ;;  %v40_v33 = vld [vmem:[%s755_s0 + $0x18] sm:$0xff]  ;;  %v95_v34 = vld [vmem:[#allocation2 + $0x10] sm:$0xff] }
  0x12   :  { %448 = vmatpush.msra.mxu3 %v113_v13  ;;  %157 = vmatpush.msrb.mxu0 %v118_v10  ;;  %v96_v35 = vld [vmem:[#allocation2 + $0x18] sm:$0xff]  ;;  %v93_v36 = vld [vmem:[#allocation2] sm:$0xff]  ;;  %v94_v37 = vld [vmem:[#allocation2 + $0x8] sm:$0xff] }
  0x13   :  { %464 = vmatpush.msra.mxu2 %v114_v14  ;;  %440 = vmatmul.msk.f32.gmra.mxu0 %vm47_vm0, %v38_v15  ;;  %v89_v38 = vld [vmem:[%s756_s1] sm:$0xff]  ;;  %v90_v39 = vld [vmem:[%s756_s1 + $0x8] sm:$0xff]  ;;  %v91_v40 = vld [vmem:[%s756_s1 + $0x10] sm:$0xff] }
  0x14   :  { %131 = vmatpush.msra.mxu1 %v111_v16  ;;  %449 = vmatpush.msra.mxu3 %v111_v16  ;;  %v92_v41 = vld [vmem:[%s756_s1 + $0x18] sm:$0xff]  ;;  %v484_v42 = vld [vmem:[%s758_s3] ss:$0 sm:$0xff]  ;;  %s542_s1 = smov 96   ;;  %s543_s3 = smov [#allocation5]  }
  0x15   :  { %158 = vmatpush.msrb.mxu0 %v116_v12  ;;  %465 = vmatpush.msra.mxu2 %v112_v17  ;;  %s424_s21 = sshll.u32 %s543_s3, 4  ;;  %s425_s21 = int_to_ptr.vmem [resolvable:$true] %s424_s21 }
  0x16   :  { %132 = vmatpush.msra.mxu1 %v109_v18  ;;  %450 = vmatpush.msra.mxu3 %v109_v18 }
  0x17   :  { %159 = vmatpush.msrb.mxu0 %v114_v14  ;;  %466 = vmatpush.msra.mxu2 %v110_v19 }
  0x18   :  { %133 = vmatpush.msra.mxu1 %v107_v20  ;;  %451 = vmatpush.msra.mxu3 %v107_v20 }
  0x19   :  { %160 = vmatpush.msrb.mxu0 %v112_v17  ;;  %467 = vmatpush.msra.mxu2 %v108_v21 }
  0x1a   :  { %134 = vmatpush.msra.mxu1 %v105_v22  ;;  %452 = vmatpush.msra.mxu3 %v105_v22 }
  0x1b   :  { %161 = vmatpush.msrb.mxu0 %v110_v19  ;;  %468 = vmatpush.msra.mxu2 %v106_v23 }
  0x1c   :  { %441 = vmatmul.msk.f32.gmra.mxu0 %vm47_vm0, %v39_v24  ;;  %135 = vmatpush.msra.mxu1 %v103_v25 }
  0x1d   :  { %453 = vmatpush.msra.mxu3 %v103_v25  ;;  %162 = vmatpush.msrb.mxu0 %v108_v21 }
  0x1e   :  { %469 = vmatpush.msra.mxu2 %v104_v26  ;;  %136 = vmatpush.msra.mxu1 %v101_v27 }
  0x1f   :  { %454 = vmatpush.msra.mxu3 %v101_v27  ;;  %163 = vmatpush.msrb.mxu0 %v106_v23 }
  0x20   :  { %470 = vmatpush.msra.mxu2 %v102_v28  ;;  %137 = vmatpush.msra.mxu1 %v99_v29 }
  0x21   :  { %455 = vmatpush.msra.mxu3 %v99_v29  ;;  %164 = vmatpush.msrb.mxu0 %v104_v26 }
  0x22   :  { %471 = vmatpush.msra.mxu2 %v100_v30  ;;  %138 = vmatpush.msra.mxu1 %v97_v31 }
  0x23   :  { %456 = vmatpush.msra.mxu3 %v97_v31  ;;  %165 = vmatpush.msrb.mxu0 %v102_v28 }
  0x24   :  { %472 = vmatpush.msra.mxu2 %v98_v32  ;;  %442 = vmatmul.msk.f32.gmra.mxu0 %vm47_vm0, %v40_v33 }
  0x25   :  { %139 = vmatpush.msra.mxu1 %v95_v34  ;;  %457 = vmatpush.msra.mxu3 %v95_v34 }
  0x26   :  { %166 = vmatpush.msrb.mxu0 %v100_v30  ;;  %473 = vmatpush.msra.mxu2 %v96_v35 }
  0x27   :  { %140 = vmatpush.msra.mxu1 %v93_v36  ;;  %458 = vmatpush.msra.mxu3 %v93_v36 }
  0x28   :  { %167 = vmatpush.msrb.mxu0 %v98_v32  ;;  %474 = vmatpush.msra.mxu2 %v94_v37 }
  0x29   :  { %141 = vmatmul.f32.vlgmr.msra.gmra.mxu1 %v89_v38  ;;  %144 = vmatmul.f32.vlgmr.msra.gmra.mxu3 %v90_v39 }
  0x2a   :  { %173 = vmatmul.f32.vlgmr.msra.gmra.mxu2 %v90_v39  ;;  %168 = vmatpush.msrb.mxu0 %v96_v35 }
  0x2c   :  { %169 = vmatpush.msrb.mxu0 %v94_v37 }
  0x2d   :  { %170 = vmatmul.f32.vlgmr.msrb.gmra.mxu0 %v89_v38 }
  0x31   :  { %147 = vmatmul.f32.gmra.mxu3 %v91_v40 }
  0x32   :  { %176 = vmatmul.f32.gmra.mxu2 %v91_v40 }
  0x39   :  { %150 = vmatmul.f32.gmra.mxu3 %v92_v41 }
  0x3a   :  { %179 = vmatmul.f32.gmra.mxu2 %v92_v41 }
  0x88   :  { %v77_v43 = vpop.f32.mrf.mxu0 }
  0x89   :  { %v616_v44 = vadd.f32 %v484_v42, %v77_v43 }
  0x8b   :  { %235 = vrot.lane.b32.xlu2 %v616_v44, %s540_s19  ;;  %195 = vrot.lane.b32.xlu0 %v616_v44, %s541_s20 }
  0x90   :  { %v80_v45 = vpop.f32.mrf.mxu0 }
  0x91   :  { %v622_v46 = vadd.f32 %v484_v42, %v80_v45 }
  0x93   :  { %275 = vrot.lane.b32.xlu2 %v616_v44, %s542_s1  ;;  %197 = vrot.lane.b32.xlu0 %v622_v46, %s541_s20 }
  0x99   :  { %v83_v47 = vpop.f32.mrf.mxu0 }
  0x9a   :  { %v628_v48 = vadd.f32 %v484_v42, %v83_v47 }
  0x9b   :  { %237 = vrot.lane.b32.xlu2 %v622_v46, %s540_s19  ;;  %277 = vrot.lane.b32.xlu0 %v622_v46, %s542_s1 }
  0x9c   :  { %199 = vrot.lane.b32.xlu1 %v628_v48, %s541_s20 }
  0xa1   :  { %v86_v49 = vpop.f32.mrf.mxu0 }
  0xa2   :  { %v636_v50 = vadd.f32 %v484_v42, %v86_v49 }
  0xa3   :  { %239 = vrot.lane.b32.xlu0 %v628_v48, %s540_s19 }
  0xa4   :  { %279 = vrot.lane.b32.xlu1 %v628_v48, %s542_s1  ;;  %281 = vrot.lane.b32.xlu2 %v636_v50, %s542_s1 }
  0xa6   :  { %v648_v51 = vpop.f32.mrf.mxu1 }
  0xaa   :  { %v652_v55 = vpop.f32.mrf.mxu0 }
  0xac   :  { %201 = vrot.lane.b32.xlu1 %v636_v50, %s541_s20  ;;  %v664_v0 = vpop.f32.mrf.mxu3 }
  0xad   :  { %v670_v6 = vpop.f32.mrf.mxu2 }
  0xb4   :  { %241 = vrot.lane.b32.xlu1 %v636_v50, %s540_s19  ;;  %v681_v16 = vpop.f32.mrf.mxu3 }
  0xb5   :  { %v689_v23 = vpop.f32.mrf.mxu2 }
  0xbc   :  { %v702_v33 = vpop.f32.mrf.mxu3 }
  0xbd   :  { %v709_v39 = vpop.f32.mrf.mxu2 }
  0xe5   :  { %v236_v52 = vpop.permute.xlu2 %235 }
  0xe6   :  { %v247_v53 = vadd.f32 %v236_v52, %v648_v51  ;;  %v355_v56 = vadd.f32 %v236_v52, %v652_v55 }
  0xe8   :  { %v251_v54 = vmax.f32 %v247_v53, 0.0  ;;  %v359_v59 = vmax.f32 %v355_v56, 0.0 }
  0xea   :  { %259 = vrot.lane.b32.xlu1 %v251_v54, %s540_s19 }
  0xed   :  { %v655_v57 = vpop.permute.xlu2 %275 }
  0xee   :  { %v287_v58 = vadd.f32 %v655_v57, %v648_v51  ;;  %v383_v61 = vadd.f32 %v655_v57, %v652_v55 }
  0xf0   :  { %v291_v60 = vmax.f32 %v287_v58, 0.0  ;;  %v387_v62 = vmax.f32 %v383_v61, 0.0 }
  0xf2   :  { %367 = vrot.lane.b32.xlu1 %v359_v59, %s540_s19  ;;  %299 = vrot.lane.b32.xlu2 %v291_v60, %s541_s20 }
  0xf5   :  { %v238_v63 = vpop.permute.xlu2 %237 }
  0xf6   :  { %v248_v1 = vadd.f32 %v238_v63, %v664_v0  ;;  %v356_v7 = vadd.f32 %v238_v63, %v670_v6 }
  0xf8   :  { %v252_v4 = vmax.f32 %v248_v1, 0.0  ;;  %v360_v11 = vmax.f32 %v356_v7, 0.0 }
  0xfa   :  { %395 = vrot.lane.b32.xlu2 %v387_v62, %s541_s20 }
  0xfd   :  { %v196_v2 = vpop.permute.xlu0 %195 }
  0xfe   :  { %v207_v3 = vadd.f32 %v196_v2, %v648_v51  ;;  %v327_v8 = vadd.f32 %v196_v2, %v652_v55  ;;  %v697_v32 = vpop.permute.xlu2 %281  ;;  %v183_v2 = vadd.f32 %v648_v51, %v616_v44 }
  0xff   :  { %v290_v35 = vadd.f32 %v697_v32, %v702_v33  ;;  %v386_v41 = vadd.f32 %v697_v32, %v709_v39 }
 0x100   :  { %v211_v5 = vmax.f32 %v207_v3, 0.0  ;;  %v331_v12 = vmax.f32 %v327_v8, 0.0  ;;  %v187_v3 = vmax.f32 %v183_v2, 0.0 }
 0x101   :  { %v294_v38 = vmax.f32 %v290_v35, 0.0  ;;  %v390_v49 = vmax.f32 %v386_v41, 0.0  ;;  %v318_v41 = vadd.f32 %v709_v39, %v636_v50 }
 0x102   :  { %261 = vrot.lane.b32.xlu2 %v252_v4, %s540_s19  ;;  %219 = vrot.lane.b32.xlu0 %v211_v5, %s542_s1  ;;  %v315_v5 = vadd.f32 %v652_v55, %v616_v44 }
 0x105   :  { %v198_v9 = vpop.permute.xlu0 %197 }
 0x106   :  { %v208_v10 = vadd.f32 %v198_v9, %v664_v0  ;;  %v328_v14 = vadd.f32 %v198_v9, %v670_v6 }
 0x108   :  { %v212_v13 = vmax.f32 %v208_v10, 0.0  ;;  %v332_v21 = vmax.f32 %v328_v14, 0.0  ;;  %v319_v10 = vmax.f32 %v315_v5, 0.0 }
 0x10a   :  { %369 = vrot.lane.b32.xlu2 %v360_v11, %s540_s19  ;;  %339 = vrot.lane.b32.xlu0 %v331_v12, %s542_s1 }
 0x10b   :  { %221 = vrot.lane.b32.xlu1 %v212_v13, %s542_s1 }
 0x10d   :  { %v679_v15 = vpop.permute.xlu0 %277 }
 0x10e   :  { %v200_v17 = vpop.permute.xlu1 %199  ;;  %v288_v18 = vadd.f32 %v679_v15, %v664_v0  ;;  %v384_v58 = vadd.f32 %v679_v15, %v670_v6 }
 0x10f   :  { %v209_v19 = vadd.f32 %v200_v17, %v681_v16  ;;  %v329_v24 = vadd.f32 %v200_v17, %v689_v23 }
 0x110   :  { %v292_v20 = vmax.f32 %v288_v18, 0.0  ;;  %v388_v60 = vmax.f32 %v384_v58, 0.0 }
 0x111   :  { %v213_v22 = vmax.f32 %v209_v19, 0.0  ;;  %v333_v30 = vmax.f32 %v329_v24, 0.0 }
 0x112   :  { %301 = vrot.lane.b32.xlu0 %v292_v20, %s541_s20 }
 0x113   :  { %223 = vrot.lane.b32.xlu2 %v213_v22, %s542_s1  ;;  %341 = vrot.lane.b32.xlu1 %v332_v21, %s542_s1 }
 0x115   :  { %v240_v25 = vpop.permute.xlu0 %239 }
 0x116   :  { %v692_v26 = vpop.permute.xlu1 %279  ;;  %v249_v27 = vadd.f32 %v240_v25, %v681_v16  ;;  %v357_v34 = vadd.f32 %v240_v25, %v689_v23  ;;  %v184_v25 = vadd.f32 %v664_v0, %v622_v46 }
 0x117   :  { %v289_v28 = vadd.f32 %v692_v26, %v681_v16  ;;  %v385_v59 = vadd.f32 %v692_v26, %v689_v23 }
 0x118   :  { %v253_v29 = vmax.f32 %v249_v27, 0.0  ;;  %v361_v37 = vmax.f32 %v357_v34, 0.0  ;;  %v185_v27 = vadd.f32 %v681_v16, %v628_v48  ;;  %v186_v34 = vadd.f32 %v702_v33, %v636_v50 }
 0x119   :  { %v293_v31 = vmax.f32 %v289_v28, 0.0  ;;  %v389_v61 = vmax.f32 %v385_v59, 0.0  ;;  %v316_v16 = vadd.f32 %v670_v6, %v622_v46 }
 0x11a   :  { %263 = vrot.lane.b32.xlu0 %v253_v29, %s540_s19 }
 0x11b   :  { %343 = vrot.lane.b32.xlu2 %v333_v30, %s542_s1  ;;  %303 = vrot.lane.b32.xlu1 %v293_v31, %s541_s20  ;;  %v188_v31 = vmax.f32 %v184_v25, 0.0 }
 0x11e   :  { %v202_v36 = vpop.permute.xlu1 %201 }
 0x11f   :  { %v210_v40 = vadd.f32 %v202_v36, %v702_v33  ;;  %v330_v52 = vadd.f32 %v202_v36, %v709_v39 }
 0x121   :  { %v214_v45 = vmax.f32 %v210_v40, 0.0  ;;  %v334_v54 = vmax.f32 %v330_v52, 0.0 }
 0x122   :  { %371 = vrot.lane.b32.xlu0 %v361_v37, %s540_s19  ;;  %v190_v37 = vmax.f32 %v186_v34, 0.0 }
 0x123   :  { %305 = vrot.lane.b32.xlu2 %v294_v38, %s541_s20 }
 0x126   :  { %v242_v42 = vpop.permute.xlu1 %241 }
 0x127   :  { %v250_v43 = vadd.f32 %v242_v42, %v702_v33  ;;  %v358_v53 = vadd.f32 %v242_v42, %v709_v39 }
 0x129   :  { %v254_v47 = vmax.f32 %v250_v43, 0.0  ;;  %v362_v56 = vmax.f32 %v358_v53, 0.0  ;;  %v322_v53 = vmax.f32 %v318_v41, 0.0 }
 0x12a   :  { %225 = vrot.lane.b32.xlu0 %v214_v45, %s542_s1  ;;  %v317_v45 = vadd.f32 %v689_v23, %v628_v48 }
 0x12b   :  { %401 = vrot.lane.b32.xlu2 %v390_v49, %s541_s20  ;;  %265 = vrot.lane.b32.xlu1 %v254_v47, %s540_s19 }
 0x12c   :  { %v321_v58 = vmax.f32 %v317_v45, 0.0 }
 0x132   :  { %345 = vrot.lane.b32.xlu0 %v334_v54, %s542_s1  ;;  %v320_v54 = vmax.f32 %v316_v16, 0.0 }
 0x133   :  { %373 = vrot.lane.b32.xlu1 %v362_v56, %s540_s19 }
 0x13a   :  { %397 = vrot.lane.b32.xlu0 %v388_v60, %s541_s20 }
 0x13b   :  { %399 = vrot.lane.b32.xlu1 %v389_v61, %s541_s20 }
 0x14c   :  { %v300_v62 = vpop.permute.xlu2 %299 }
 0x154   :  { %v396_v63 = vpop.permute.xlu2 %395 }
 0x15c   :  { %v260_v1 = vpop.permute.xlu1 %259  ;;  %v262_v8 = vpop.permute.xlu2 %261 }
 0x164   :  { %v368_v11 = vpop.permute.xlu1 %367  ;;  %v370_v19 = vpop.permute.xlu2 %369 }
 0x16d   :  { %v224_v44 = vpop.permute.xlu2 %223 }
 0x174   :  { %v220_v4 = vpop.permute.xlu0 %219 }
 0x175   :  { %v231_v7 = vmax.f32 %v187_v3, %v220_v4  ;;  %v344_v28 = vpop.permute.xlu2 %343 }
 0x177   :  { %v271_v9 = vmax.f32 %v231_v7, %v260_v1 }
 0x179   :  { %v311_v12 = vmax.f32 %v271_v9, %v300_v62 }
 0x17b   :  { %v323_v13 = vmax.f32 %v311_v12, %v319_v10 }
 0x17c   :  { %v340_v14 = vpop.permute.xlu0 %339 }
 0x17d   :  { %v351_v17 = vmax.f32 %v323_v13, %v340_v14  ;;  %v222_v20 = vpop.permute.xlu1 %221  ;;  %v306_v47 = vpop.permute.xlu2 %305 }
 0x17e   :  { %v232_v35 = vmax.f32 %v188_v31, %v222_v20 }
 0x17f   :  { %v379_v18 = vmax.f32 %v351_v17, %v368_v11 }
 0x180   :  { %v272_v0 = vmax.f32 %v232_v35, %v262_v8 }
 0x181   :  { %v407_v21 = vmax.f32 %v379_v18, %v396_v63 }
 0x183   :  { %v411_v51 = vadd.f32 %v407_v21, %v655_v57  ;;  %v189_v57 = vmax.f32 %v185_v27, 0.0 }
 0x184   :  { %v302_v22 = vpop.permute.xlu0 %301 }
 0x185   :  { %416 = vst.msk [vmem:[#allocation5] sm:$0xff] %vm415_vm1, %v411_v51  ;;  %v342_v55 = vpop.permute.xlu1 %341  ;;  %v233_v36 = vmax.f32 %v189_v57, %v224_v44  ;;  %v312_v33 = vmax.f32 %v272_v0, %v302_v22  ;;  %v402_v63 = vpop.permute.xlu2 %401 }
 0x187   :  { %v324_v59 = vmax.f32 %v312_v33, %v320_v54 }
 0x189   :  { %v352_v6 = vmax.f32 %v324_v59, %v342_v55 }
 0x18b   :  { %v380_v23 = vmax.f32 %v352_v6, %v370_v19 }
 0x18c   :  { %v264_v24 = vpop.permute.xlu0 %263 }
 0x18d   :  { %v304_v30 = vpop.permute.xlu1 %303  ;;  %v273_v38 = vmax.f32 %v233_v36, %v264_v24 }
 0x18f   :  { %v313_v52 = vmax.f32 %v273_v38, %v304_v30 }
 0x191   :  { %v325_v50 = vmax.f32 %v313_v52, %v321_v58 }
 0x193   :  { %v353_v1 = vmax.f32 %v325_v50, %v344_v28 }
 0x194   :  { %v372_v29 = vpop.permute.xlu0 %371 }
 0x195   :  { %v381_v3 = vmax.f32 %v353_v1, %v372_v29 }
 0x19c   :  { %v226_v40 = vpop.permute.xlu0 %225 }
 0x19d   :  { %v266_v42 = vpop.permute.xlu1 %265  ;;  %v234_v43 = vmax.f32 %v190_v37, %v226_v40 }
 0x19f   :  { %v274_v49 = vmax.f32 %v234_v43, %v266_v42 }
 0x1a1   :  { %v314_v56 = vmax.f32 %v274_v49, %v306_v47 }
 0x1a3   :  { %v326_v60 = vmax.f32 %v314_v56, %v322_v53 }
 0x1a4   :  { %v346_v39 = vpop.permute.xlu0 %345 }
 0x1a5   :  { %v374_v61 = vpop.permute.xlu1 %373  ;;  %v354_v62 = vmax.f32 %v326_v60, %v346_v39 }
 0x1a7   :  { %v382_v46 = vmax.f32 %v354_v62, %v374_v61 }
 0x1a9   :  { %v410_v2 = vmax.f32 %v382_v46, %v402_v63 }
 0x1ab   :  { %v414_v48 = vadd.f32 %v410_v2, %v697_v32 }
 0x1ac   :  { %v398_v4 = vpop.permute.xlu0 %397 }
 0x1ad   :  { %419 = vst.msk [vmem:[#allocation5 + $0x18] sm:$0xff] %vm415_vm1, %v414_v48  ;;  %v400_v5 = vpop.permute.xlu1 %399  ;;  %v408_v7 = vmax.f32 %v380_v23, %v398_v4 }
 0x1ae   :  { %v409_v8 = vmax.f32 %v381_v3, %v400_v5 }
 0x1af   :  { %v412_v9 = vadd.f32 %v408_v7, %v679_v15 }
 0x1b0   :  { %v413_v32 = vadd.f32 %v409_v8, %v692_v26 }
 0x1b1   :  { %417 = vst.msk [vmem:[#allocation5 + $0x8] sm:$0xff] %vm415_vm1, %v412_v9 }
 0x1b2   :  { %418 = vst.msk [vmem:[#allocation5 + $0x10] sm:$0xff] %vm415_vm1, %v413_v32 }
 0x1b3   :  { %432 = dma.vmem_to_hbm [thread:$0]  %s425_s21, 512, %s427_s24, [#allocation4], %s544_s25, %s544_s25, %s545_s26  }
 0x1b4   :  { %535 = dma.done.wait [#allocation4], 512  }
 0x1b5   :  { %536 = vsyncadd [#allocation4], 4294966784 }
 0x1b6   :  { %437 = vsyncpa [#allocation3], 1 }
 0x1b7   :  { %438 = vsyncpa [#allocation4], 1 }

</bundles_post_ra>
